<compile_context>
chip_gen: v7x
topology: tpu7x:2x2x1
jax: 0.10.0
libtpu: 0.0.40
codegen_flags: <defaults>
</compile_context>

<pallas_src>
import functools

import jax
import jax.numpy as jnp
from jax.experimental import pallas as pl
from jax.experimental.pallas import tpu as pltpu


# ----------------------------------------------------------------------------
# Kernels
# ----------------------------------------------------------------------------
def _gct_kernel(x_ref, abg_ref, o_ref, *, epsilon, mode, after_relu):
    """Single-pass kernel: one (tb, C, HW) block per grid step."""
    x32 = x_ref[...].astype(jnp.float32)                  # (tb, C, HW)
    abg = abg_ref[...]                                     # (3, C, 1) f32
    alpha, gamma, beta = abg[0:1], abg[1:2], abg[2:3]      # each (1, C, 1)

    if mode == 'l2':
        ss = jnp.sum(x32 * x32, axis=2, keepdims=True)             # (tb, C, 1)
        emb = jnp.sqrt(ss + epsilon) * alpha
        mean_sq = jnp.mean(emb * emb, axis=1, keepdims=True)       # (tb, 1, 1)
        norm = gamma / jnp.sqrt(mean_sq + epsilon)
    else:  # 'l1'
        _x = x32 if after_relu else jnp.abs(x32)
        emb = jnp.sum(_x, axis=2, keepdims=True) * alpha
        mean_abs = jnp.mean(jnp.abs(emb), axis=1, keepdims=True)
        norm = gamma / (mean_abs + epsilon)

    gate = 1.0 + jnp.tanh(emb * norm + beta)                       # (tb, C, 1)
    # f32 multiply, single rounding to the output dtype (matches reference).
    o_ref[...] = (x32 * gate).astype(o_ref.dtype)


def _gct_reduce_kernel(x_ref, acc_ref, *, mode, after_relu, hw_total, hw_chunk):
    """Two-pass fallback, pass 1: accumulate the spatial sum per (b, c)."""
    h = pl.program_id(1)

    @pl.when(h == 0)
    def _():
        acc_ref[...] = jnp.zeros_like(acc_ref)

    x32 = x_ref[...].astype(jnp.float32)                   # (1, C, hw_chunk)
    # Mask lanes past the true HW extent (the last chunk's padding is garbage).
    lane = jax.lax.broadcasted_iota(jnp.int32, x32.shape, 2)
    valid = (h * hw_chunk + lane) < hw_total

    if mode == 'l2':
        v = x32 * x32
    else:  # 'l1'
        v = x32 if after_relu else jnp.abs(x32)
    v = jnp.where(valid, v, 0.0)
    acc_ref[...] += jnp.sum(v, axis=2, keepdims=True)


def _gct_apply_kernel(x_ref, gate_ref, o_ref):
    """Two-pass fallback, pass 2: spatially tiled gate multiply."""
    x32 = x_ref[...].astype(jnp.float32)
    o_ref[...] = (x32 * gate_ref[...]).astype(o_ref.dtype)


# ----------------------------------------------------------------------------
# Sizing helpers
# ----------------------------------------------------------------------------
def _round_up(v, m):
    return (v + m - 1) // m * m


def _tpu_vmem_capacity_bytes(default=64 * 1024 * 1024):
    try:
        cap = int(pltpu.get_tpu_info().vmem_capacity_bytes)
        if cap > 0:
            return cap
    except Exception:
        pass
    return default  # conservative (v7x per-TC) if the query is unavailable


def _tpu_num_tensorcores(default=1):
    try:
        info = pltpu.get_tpu_info()
        for name in ("num_cores", "core_count", "num_tensorcores"):
            v = getattr(info, name, None)
            if isinstance(v, int) and v > 0:
                return v
    except Exception:
        pass
    try:
        v = getattr(jax.devices()[0], "num_cores", None)
        if isinstance(v, int) and v > 0:
            return v
    except Exception:
        pass
    return default


def _largest_divisor_tb(B, max_tb, num_cores):
    """Largest divisor of B that fits; prefer an even per-core grid split."""
    max_tb = max(1, min(max_tb, B))
    divisors = [d for d in range(1, B + 1) if B % d == 0 and d <= max_tb]
    if num_cores > 1 and B >= num_cores:
        balanced = [d for d in divisors if (B // d) % num_cores == 0]
        if balanced:
            return max(balanced)
    return max(divisors)


# ----------------------------------------------------------------------------
# Forward wrappers
# ----------------------------------------------------------------------------
def _gct_forward_two_pass(x3, abg, shape4, *, epsilon, mode, after_relu,
                          budget, vmem_limit_bytes, hw_chunk=None):
    B, C, H, W = shape4
    HW = H * W
    itemsize = jnp.dtype(x3.dtype).itemsize
    Cp = _round_up(C, 8)

    if hw_chunk is None:
        # Per grid step: 2x double-buffered in + 2x out (native dtype) + f32 temps.
        per_lane = Cp * (4 * itemsize + 2 * 4)
        hw_chunk = max(128, (budget // per_lane) // 128 * 128)
    hw_chunk = _round_up(hw_chunk, 128)
    hw_chunk = min(hw_chunk, _round_up(HW, 128))
    n_hw = pl.cdiv(HW, hw_chunk)

    # ---- pass 1: per-(b, c) spatial reduction (reduction axis last) -------
    reduce_kernel = functools.partial(
        _gct_reduce_kernel, mode=mode, after_relu=after_relu,
        hw_total=HW, hw_chunk=hw_chunk)
    sums = pl.pallas_call(
        reduce_kernel,
        out_shape=jax.ShapeDtypeStruct((B, C, 1), jnp.float32),
        grid_spec=pltpu.PrefetchScalarGridSpec(
            num_scalar_prefetch=0,
            grid=(B, n_hw),
            in_specs=[pl.BlockSpec((1, C, hw_chunk), lambda b, h: (b, 0, h))],
            out_specs=pl.BlockSpec((1, C, 1), lambda b, h: (b, 0, 0)),
        ),
        compiler_params=pltpu.CompilerParams(
            dimension_semantics=("parallel", "arbitrary"),
            vmem_limit_bytes=vmem_limit_bytes),
    )(x3)

    # ---- tiny (B, C, 1) gate math in plain JAX -----------------------------
    a3, g3, b3 = abg[0:1], abg[1:2], abg[2:3]
    if mode == 'l2':
        emb = jnp.sqrt(sums + epsilon) * a3
        norm = g3 / jnp.sqrt(jnp.mean(emb * emb, axis=1, keepdims=True) + epsilon)
    else:  # 'l1'
        emb = sums * a3
        norm = g3 / (jnp.mean(jnp.abs(emb), axis=1, keepdims=True) + epsilon)
    gate = (1.0 + jnp.tanh(emb * norm + b3)).astype(jnp.float32)   # (B, C, 1)

    # ---- pass 2: spatially tiled gate multiply -----------------------------
    out = pl.pallas_call(
        _gct_apply_kernel,
        out_shape=jax.ShapeDtypeStruct((B, C, HW), x3.dtype),
        grid_spec=pltpu.PrefetchScalarGridSpec(
            num_scalar_prefetch=0,
            grid=(B, n_hw),
            in_specs=[
                pl.BlockSpec((1, C, hw_chunk), lambda b, h: (b, 0, h)),
                pl.BlockSpec((1, C, 1), lambda b, h: (b, 0, 0)),
            ],
            out_specs=pl.BlockSpec((1, C, hw_chunk), lambda b, h: (b, 0, h)),
        ),
        compiler_params=pltpu.CompilerParams(
            dimension_semantics=("parallel", "parallel"),
            vmem_limit_bytes=vmem_limit_bytes),
    )(x3, gate)

    return out.reshape(B, C, H, W)


def gct_forward(x, alpha, gamma, beta, *, epsilon=1e-5, mode='l2',
                after_relu=False, force_two_pass=False, hw_chunk=None):
    """x: (B, C, H, W) float array (NCHW, matching the PyTorch module)."""
    if mode not in ('l2', 'l1'):
        raise ValueError('Unknown mode!')

    B, C, H, W = x.shape
    HW = H * W
    itemsize = jnp.dtype(x.dtype).itemsize

    x3 = x.reshape(B, C, HW)            # free view of contiguous NCHW; no pad
    abg = jnp.stack([
        jnp.asarray(alpha, jnp.float32).reshape(C),
        jnp.asarray(gamma, jnp.float32).reshape(C),
        jnp.asarray(beta, jnp.float32).reshape(C),
    ]).reshape(3, C, 1)

    # --- VMEM budget derived from the hardware ------------------------------
    vmem_cap = _tpu_vmem_capacity_bytes()
    vmem_limit_bytes = min(int(0.75 * vmem_cap), 100 * 1024 * 1024)
    budget = int(0.8 * vmem_limit_bytes)   # headroom for Mosaic internal scratch

    # VMEM footprint of one sample's block (vregs pad to (8, 128) internally):
    # 2x double-buffered input + 2x double-buffered output + f32 temporaries.
    Cp, HWp = _round_up(C, 8), _round_up(HW, 128)
    per_sample = 4 * (Cp * HWp * itemsize) + 2 * (Cp * HWp * 4)
    max_tb = budget // per_sample

    if force_two_pass or max_tb < 1:
        # A single sample does not fit the budget: spatial-split fallback.
        return _gct_forward_two_pass(
            x3, abg, (B, C, H, W), epsilon=epsilon, mode=mode,
            after_relu=after_relu, budget=budget,
            vmem_limit_bytes=vmem_limit_bytes, hw_chunk=hw_chunk)

    num_cores = _tpu_num_tensorcores()
    tb = _largest_divisor_tb(B, int(max_tb), num_cores)
    grid_b = B // tb

    kernel = functools.partial(_gct_kernel, epsilon=epsilon, mode=mode,
                               after_relu=after_relu)
    out = pl.pallas_call(
        kernel,
        out_shape=jax.ShapeDtypeStruct((B, C, HW), x.dtype),
        grid_spec=pltpu.PrefetchScalarGridSpec(
            num_scalar_prefetch=0,
            grid=(grid_b,),
            in_specs=[
                pl.BlockSpec((tb, C, HW), lambda b: (b, 0, 0)),   # x
                pl.BlockSpec((3, C, 1), lambda b: (0, 0, 0)),     # alpha/gamma/beta
            ],
            out_specs=pl.BlockSpec((tb, C, HW), lambda b: (b, 0, 0)),
        ),
        compiler_params=pltpu.CompilerParams(
            dimension_semantics=("parallel",),
            vmem_limit_bytes=vmem_limit_bytes),
    )(x3, abg)

    return out.reshape(B, C, H, W)


# ----------------------------------------------------------------------------
# Pure-JAX reference mirroring the PyTorch forward
# ----------------------------------------------------------------------------
def gct_reference(x, alpha, gamma, beta, *, epsilon=1e-5, mode='l2',
                  after_relu=False):
    x = x.astype(jnp.float32)
    alpha = jnp.asarray(alpha, jnp.float32).reshape(1, -1, 1, 1)
    gamma = jnp.asarray(gamma, jnp.float32).reshape(1, -1, 1, 1)
    beta = jnp.asarray(beta, jnp.float32).reshape(1, -1, 1, 1)
    if mode == 'l2':
        emb = jnp.sqrt(jnp.sum(x ** 2, axis=(2, 3), keepdims=True) + epsilon) * alpha
        norm = gamma / jnp.sqrt(jnp.mean(emb ** 2, axis=1, keepdims=True) + epsilon)
    else:
        _x = x if after_relu else jnp.abs(x)
        emb = jnp.sum(_x, axis=(2, 3), keepdims=True) * alpha
        norm = gamma / (jnp.mean(jnp.abs(emb), axis=1, keepdims=True) + epsilon)
    gate = 1.0 + jnp.tanh(emb * norm + beta)
    return x * gate


if __name__ == "__main__":
    key = jax.random.PRNGKey(0)

    # --- Main check: matches the module's nn.Parameter shapes ---------------
    B, C, H, W = 2, 4, 16, 16
    x = jax.random.normal(key, (B, C, H, W), dtype=jnp.float32)
    alpha = jnp.ones((1, C, 1, 1), dtype=jnp.float32)
    gamma = jnp.full((1, C, 1, 1), 0.5, dtype=jnp.float32)
    beta = jnp.full((1, C, 1, 1), 0.1, dtype=jnp.float32)

    out = jax.block_until_ready(gct_forward(x, alpha, gamma, beta, mode='l2'))
    ref = gct_reference(x, alpha, gamma, beta, mode='l2')
    assert out.shape == (B, C, H, W)
    assert jnp.allclose(out, ref, atol=1e-5, rtol=1e-5)

    # --- Unaligned shapes (C not mult of 8, HW not mult of 128), l1 mode ----
    B2, C2, H2, W2 = 3, 5, 7, 7
    x2 = jax.random.normal(jax.random.PRNGKey(1), (B2, C2, H2, W2), jnp.float32)
    a2 = jnp.ones((1, C2, 1, 1), jnp.float32)
    g2 = jnp.full((1, C2, 1, 1), 0.3, jnp.float32)
    b2 = jnp.full((1, C2, 1, 1), -0.2, jnp.float32)

    out2 = jax.block_until_ready(gct_forward(x2, a2, g2, b2, mode='l1'))
    ref2 = gct_reference(x2, a2, g2, b2, mode='l1')
    assert out2.shape == (B2, C2, H2, W2)
    assert jnp.allclose(out2, ref2, atol=1e-5, rtol=1e-5)

    # --- Two-pass spatial-split fallback (forced), ragged last HW chunk -----
    B3, C3, H3, W3 = 2, 6, 13, 13   # HW=169 -> 2 chunks of 128, last masked
    x3 = jax.random.normal(jax.random.PRNGKey(2), (B3, C3, H3, W3), jnp.float32)
    a3 = jnp.ones((1, C3, 1, 1), jnp.float32)
    g3 = jnp.full((1, C3, 1, 1), 0.7, jnp.float32)
    b3 = jnp.full((1, C3, 1, 1), 0.05, jnp.float32)

    out3 = jax.block_until_ready(
        gct_forward(x3, a3, g3, b3, mode='l2', force_two_pass=True, hw_chunk=128))
    ref3 = gct_reference(x3, a3, g3, b3, mode='l2')
    assert out3.shape == (B3, C3, H3, W3)
    assert jnp.allclose(out3, ref3, atol=1e-5, rtol=1e-5)

    # --- bf16 path (gate math in f32, single final rounding) ----------------
    x4 = jax.random.normal(jax.random.PRNGKey(3), (2, 8, 8, 8), jnp.bfloat16)
    a4 = jnp.ones((1, 8, 1, 1), jnp.float32)
    g4 = jnp.full((1, 8, 1, 1), 0.4, jnp.float32)
    b4 = jnp.full((1, 8, 1, 1), 0.1, jnp.float32)
    out4 = jax.block_until_ready(gct_forward(x4, a4, g4, b4, mode='l2'))
    ref4 = gct_reference(x4, a4, g4, b4, mode='l2')
    assert out4.dtype == jnp.bfloat16
    assert jnp.allclose(out4.astype(jnp.float32), ref4, atol=2e-2, rtol=2e-2)

    print("KERNEL_OK")
</pallas_src>

<mosaic_0001>
module attributes {stable_mosaic.version = 11 : i64} {
  func.func @_gct_kernel(%arg0: i32, %arg1: memref<2x4x256xf32, #tpu.memory_space<vmem>>, %arg2: memref<3x4x1xf32, #tpu.memory_space<vmem>>, %arg3: memref<2x4x256xf32, #tpu.memory_space<vmem>>) attributes {dimension_semantics = [#tpu.dimension_semantics<parallel>], iteration_bounds = array<i64: 1>, scalar_prefetch = 0 : i64, scratch_operands = 0 : i64, tpu.core_type = #tpu.core_type<tc>, window_params = [{transform_indices = @transform_0, window_bounds = array<i64: 2, 4, 256>}, {pipeline_mode = #tpu.pipeline_mode<synchronous>, transform_indices = @transform_1, window_bounds = array<i64: 3, 4, 1>}, {transform_indices = @transform_2, window_bounds = array<i64: 2, 4, 256>}]} {
    %c0 = arith.constant 0 : index
    %c0_0 = arith.constant 0 : index
    %c0_1 = arith.constant 0 : index
    %0 = vector.load %arg1[%c0, %c0_0, %c0_1] : memref<2x4x256xf32, #tpu.memory_space<vmem>>, vector<2x4x256xf32>
    %c0_2 = arith.constant 0 : index
    %c0_3 = arith.constant 0 : index
    %c0_4 = arith.constant 0 : index
    %1 = vector.load %arg2[%c0_2, %c0_3, %c0_4] : memref<3x4x1xf32, #tpu.memory_space<vmem>>, vector<3x4x1xf32>
    %2 = vector.extract_strided_slice %1 {offsets = [0, 0, 0], sizes = [1, 4, 1], strides = [1, 1, 1]} : vector<3x4x1xf32> to vector<1x4x1xf32>
    %3 = vector.extract_strided_slice %1 {offsets = [1, 0, 0], sizes = [1, 4, 1], strides = [1, 1, 1]} : vector<3x4x1xf32> to vector<1x4x1xf32>
    %4 = vector.extract_strided_slice %1 {offsets = [2, 0, 0], sizes = [1, 4, 1], strides = [1, 1, 1]} : vector<3x4x1xf32> to vector<1x4x1xf32>
    %5 = arith.mulf %0, %0 : vector<2x4x256xf32>
    %cst = arith.constant dense<0.000000e+00> : vector<2x4xf32>
    %6 = vector.multi_reduction <add>, %5, %cst [2] : vector<2x4x256xf32> to vector<2x4xf32>
    %7 = vector.shape_cast %6 : vector<2x4xf32> to vector<2x4x1xf32>
    %cst_5 = arith.constant 9.99999974E-6 : f32
    %8 = vector.broadcast %cst_5 : f32 to vector<2x4x1xf32>
    %9 = arith.addf %7, %8 : vector<2x4x1xf32>
    %10 = math.sqrt %9 : vector<2x4x1xf32>
    %11 = vector.broadcast %2 : vector<1x4x1xf32> to vector<2x4x1xf32>
    %12 = arith.mulf %10, %11 : vector<2x4x1xf32>
    %13 = arith.mulf %12, %12 : vector<2x4x1xf32>
    %cst_6 = arith.constant dense<0.000000e+00> : vector<2x1xf32>
    %14 = vector.multi_reduction <add>, %13, %cst_6 [1] : vector<2x4x1xf32> to vector<2x1xf32>
    %15 = vector.shape_cast %14 : vector<2x1xf32> to vector<2x1x1xf32>
    %cst_7 = arith.constant 4.000000e+00 : f32
    %16 = vector.broadcast %cst_7 : f32 to vector<2x1x1xf32>
    %17 = arith.divf %15, %16 : vector<2x1x1xf32>
    %cst_8 = arith.constant 9.99999974E-6 : f32
    %18 = vector.broadcast %cst_8 : f32 to vector<2x1x1xf32>
    %19 = arith.addf %17, %18 : vector<2x1x1xf32>
    %20 = math.sqrt %19 : vector<2x1x1xf32>
    %21 = vector.broadcast %3 : vector<1x4x1xf32> to vector<2x4x1xf32>
    %22 = vector.broadcast %20 : vector<2x1x1xf32> to vector<2x4x1xf32>
    %23 = arith.divf %21, %22 : vector<2x4x1xf32>
    %24 = arith.mulf %12, %23 : vector<2x4x1xf32>
    %25 = vector.broadcast %4 : vector<1x4x1xf32> to vector<2x4x1xf32>
    %26 = arith.addf %24, %25 : vector<2x4x1xf32>
    %27 = math.tanh %26 : vector<2x4x1xf32>
    %cst_9 = arith.constant 1.000000e+00 : f32
    %28 = vector.broadcast %cst_9 : f32 to vector<2x4x1xf32>
    %29 = arith.addf %28, %27 : vector<2x4x1xf32>
    %30 = vector.broadcast %29 : vector<2x4x1xf32> to vector<2x4x256xf32>
    %31 = arith.mulf %0, %30 : vector<2x4x256xf32>
    %c0_10 = arith.constant 0 : index
    %c0_11 = arith.constant 0 : index
    %c0_12 = arith.constant 0 : index
    %32 = vector.load %arg3[%c0_10, %c0_11, %c0_12] : memref<2x4x256xf32, #tpu.memory_space<vmem>>, vector<2x4x256xf32>
    tpu.vector_store %arg3[%c0_10, %c0_11, %c0_12], %31 {strides = array<i32>} : memref<2x4x256xf32, #tpu.memory_space<vmem>>, vector<2x4x256xf32>,
    return
  }
  func.func @transform_0(%arg0: i32) -> (i32, i32, i32) {
    %c0_i32 = arith.constant 0 : i32
    %c0_i32_0 = arith.constant 0 : i32
    %c0_i32_1 = arith.constant 0 : i32
    return %arg0, %c0_i32, %c0_i32_0 : i32, i32, i32
  }
  func.func @transform_1(%arg0: i32) -> (i32, i32, i32) {
    %c0_i32 = arith.constant 0 : i32
    %c0_i32_0 = arith.constant 0 : i32
    %c0_i32_1 = arith.constant 0 : i32
    %c0_i32_2 = arith.constant 0 : i32
    return %c0_i32, %c0_i32_0, %c0_i32_1 : i32, i32, i32
  }
  func.func @transform_2(%arg0: i32) -> (i32, i32, i32) {
    %c0_i32 = arith.constant 0 : i32
    %c0_i32_0 = arith.constant 0 : i32
    %c0_i32_1 = arith.constant 0 : i32
    return %arg0, %c0_i32, %c0_i32_0 : i32, i32, i32
  }
}

</mosaic_0001>

<bundles_post_ra>
// kernel: tpu_custom_call.1
= control target key start
LH: loop header
LB: loop body
LE: loop exit
PB: predicated region body
PF: predicated region fallthrough
CT: control target
= control target key end

     0   :  { %7 = vsyncpa [#allocation3], 0  ;;  %s303_s0 = inlined_call_operand.hbm [shape: f32[2,4,256], index: 0, kind: input, shape index: {}]   ;;  %s304_s1 = inlined_call_operand.vmem [shape: f32[3,4,1], index: 1, kind: input, shape index: {}]   ;;  %s305_s2 = inlined_call_operand.hbm [shape: f32[2,4,256], index: 2, kind: output, shape index: {}]  }
   0x1   :  { %8 = vsyncpa [#allocation4], 0  ;;  %s233_s9 = smov [#allocation2]   ;;  %s185_s13 = scalar_lea.hbm %s303_s0, 256 }
   0x2   :  { %s14_s10 = sshll.u32 %s233_s9, 4  ;;  %p186_p0 = scmp.ne.s32.totalorder %s303_s0, %s185_s13  ;;  %s15_s10 = int_to_ptr.vmem [resolvable:$true] %s14_s10 }
   0x3   :  { %p189_p1 = scmp.lt.u32.totalorder %s185_s13, %s303_s0 }
   0x5   :  { %p191_p2 = pnand %p189_p1, %p186_p0 }
   0x7   :  { %194 = shalt.err (!%p191_p2)
}
   0x8   :  { %s195_s18 = scalar_lea.vmem %s15_s10, 256  ;;  %p200_p4 = scmp.lt.s32.totalorder %s15_s10, %s15_s10 }
   0x9   :  { %p196_p3 = scmp.ne.s32.totalorder %s15_s10, %s195_s18  ;;  %p201_p5 = scmp.lt.s32.totalorder %s195_s18, %s195_s18 }
   0xb   :  { %p202_p6 = por %p201_p5, %p200_p4 }
   0xd   :  { %p203_p7 = pnand %p202_p6, %p196_p3 }
   0xf   :  { %206 = shalt.err (!%p203_p7)
}
  0x10   :  { %s234_s19 = smov 128   ;;  %s235_s20 = smov 8  }
  0x11   :  { %20 = dma.hbm_to_vmem [thread:$0]  %s303_s0, 256, %s15_s10, [#allocation3], %s234_s19, %s234_s19, %s235_s20  }
  0x12   :  { %229 = dma.done.wait [#allocation3], 256  }
  0x13   :  { %230 = vsyncadd [#allocation3], 4294967040  ;;  %v269_v0 = vld [vmem:[#allocation2] sm:$0xff]  ;;  %vm39_vm0 = vcmask 1043456   ;;  %v271_v1 = vld [vmem:[#allocation2 + $0x8] sm:$0xff]  ;;  %v236_v12 = vmov 0  }
  0x14   :  { %v31_v2 = vmul.f32 %v269_v0, %v269_v0  ;;  %v32_v3 = vmul.f32 %v271_v1, %v271_v1  ;;  %167 = vset.pattern.permute.xlu1 %v236_v12  ;;  %168 = vset.pattern.permute.xlu0 %v236_v12  ;;  %v28_v19 = vld [vmem:[%s304_s1] sm:$0xf]  ;;  %vm70_vm3 = vcmask 3072   ;;  %v29_v60 = vld [vmem:[%s304_s1 + $0x4] sm:$0xf] }
  0x15   :  { %v30_v63 = vld [vmem:[%s304_s1 + $0x8] sm:$0xf]  ;;  %v237_v12 = vmov 839922192   ;;  %s238_s1 = smov [#allocation5]  }
  0x16   :  { %v35_v4 = vcombine.high %v31_v2, %v31_v2  ;;  %v40_v5 = vsel %vm39_vm0, %v31_v2, 0.0  ;;  %v36_v6 = vcombine.high %v32_v3, %v32_v3  ;;  %v45_v8 = vsel %vm39_vm0, %v32_v3, 0.0  ;;  %s149_s28 = sshll.u32 %s238_s1, 4  ;;  %s150_s28 = int_to_ptr.vmem [resolvable:$true] %s149_s28 }
  0x17   :  { %s207_s29 = scalar_lea.vmem %s150_s28, 256  ;;  %p212_p9 = scmp.lt.s32.totalorder %s150_s28, %s150_s28 }
  0x18   :  { %v41_v7 = vsel %vm39_vm0, %v35_v4, 0.0  ;;  %v46_v9 = vsel %vm39_vm0, %v36_v6, 0.0  ;;  %p208_p8 = scmp.ne.s32.totalorder %s150_s28, %s207_s29  ;;  %p213_p10 = scmp.lt.s32.totalorder %s207_s29, %s207_s29 }
  0x19   :  { %v42_v10 = vadd.f32 %v41_v7, %v40_v5  ;;  %v47_v11 = vadd.f32 %v46_v9, %v45_v8 }
  0x1a   :  { %p214_p11 = por %p213_p10, %p212_p9 }
  0x1b   :  { %43 = vadd.xlane.f32.xlu0 %v42_v10 }
  0x1c   :  { %p215_p12 = pnand %p214_p11, %p208_p8 }
  0x1f   :  { %48 = vadd.xlane.f32.xlu0 %v47_v11 }
  0xa8   :  { %v44_v13 = vpop.xlane.xlu0 %43 }
  0xa9   :  { %v50_v14 = vadd.f32 1e-05, %v44_v13  ;;  %v125_v13 = vunpack.c.l.s4 %v237_v12 }
  0xab   :  { %169 = vrsqrt.f32 %v50_v14  ;;  %vm54_vm1 = vcmp.eq.f32.partialorder %v50_v14, inf  ;;  %v57_v20 = vand.u32 2147483648, %v50_v14  ;;  %vm56_vm2 = vcmp.eq.f32.partialorder %v50_v14, 0.0 }
  0xac   :  { %v49_v15 = vpop.xlane.xlu0 %48 }
  0xad   :  { %v51_v16 = vadd.f32 1e-05, %v49_v15  ;;  %v126_v15 = vunpack.c.0.s8 %v125_v13 }
  0xaf   :  { %171 = vrsqrt.f32 %v51_v16  ;;  %vm61_vm4 = vcmp.eq.f32.partialorder %v51_v16, inf  ;;  %v64_v26 = vand.u32 2147483648, %v51_v16  ;;  %vm63_vm5 = vcmp.eq.f32.partialorder %v51_v16, 0.0 }
  0xb5   :  { %v170_v17 = vpop.eup %169 }
  0xb6   :  { %v53_v18 = vmul.f32 %v170_v17, %v50_v14 }
  0xb8   :  { %v55_v21 = vsel %vm54_vm1, %v50_v14, %v53_v18  ;;  %v127_v14 = vlaneseq }
  0xb9   :  { %v172_v22 = vpop.eup %171  ;;  %v58_v23 = vsel %vm56_vm2, %v57_v20, %v55_v21 }
  0xba   :  { %v60_v24 = vmul.f32 %v172_v22, %v51_v16  ;;  %v66_v25 = vmul.f32 %v58_v23, %v28_v19 }
  0xbc   :  { %v68_v27 = vmul.f32 %v66_v25, %v66_v25  ;;  %v62_v28 = vsel %vm61_vm4, %v51_v16, %v60_v24  ;;  %v128_v16 = vshrl.u32 %v127_v14, 7 }
  0xbd   :  { %v65_v29 = vsel %vm63_vm5, %v64_v26, %v62_v28 }
  0xbe   :  { %v71_v30 = vsel %vm70_vm3, %v68_v27, 0.0  ;;  %v67_v31 = vmul.f32 %v65_v29, %v28_v19  ;;  %v129_v17 = vsub.s32 %v126_v15, %v128_v16 }
  0xbf   :  { %v72_v32 = vrot.slane %v71_v30, 4 }
  0xc0   :  { %v69_v33 = vmul.f32 %v67_v31, %v67_v31 }
  0xc1   :  { %v73_v34 = vadd.f32 %v72_v32, %v71_v30 }
  0xc2   :  { %v78_v35 = vsel %vm70_vm3, %v69_v33, 0.0 }
  0xc3   :  { %v74_v36 = vrot.slane %v73_v34, 2  ;;  %v79_v37 = vrot.slane %v78_v35, 4 }
  0xc5   :  { %v75_v38 = vadd.f32 %v74_v36, %v73_v34  ;;  %v80_v39 = vadd.f32 %v79_v37, %v78_v35 }
  0xc7   :  { %v76_v40 = vrot.slane %v75_v38, 1  ;;  %v81_v41 = vrot.slane %v80_v39, 2 }
  0xc9   :  { %v77_v42 = vadd.f32 %v76_v40, %v75_v38  ;;  %v82_v43 = vadd.f32 %v81_v41, %v80_v39 }
  0xcb   :  { %v86_v44 = vmul.f32 0.25, %v77_v42  ;;  %v83_v45 = vrot.slane %v82_v43, 1 }
  0xcd   :  { %v88_v46 = vadd.f32 1e-05, %v86_v44  ;;  %v84_v47 = vadd.f32 %v83_v45, %v82_v43 }
  0xcf   :  { %173 = vrsqrt.f32 %v88_v46  ;;  %v87_v48 = vmul.f32 0.25, %v84_v47  ;;  %vm92_vm6 = vcmp.eq.f32.partialorder %v88_v46, inf  ;;  %v95_v52 = vand.u32 2147483648, %v88_v46 }
  0xd0   :  { %vm94_vm7 = vcmp.eq.f32.partialorder %v88_v46, 0.0 }
  0xd1   :  { %v89_v49 = vadd.f32 1e-05, %v87_v48 }
  0xd3   :  { %175 = vrsqrt.f32 %v89_v49  ;;  %vm99_vm8 = vcmp.eq.f32.partialorder %v89_v49, inf  ;;  %v102_v57 = vand.u32 2147483648, %v89_v49  ;;  %vm101_vm9 = vcmp.eq.f32.partialorder %v89_v49, 0.0 }
  0xd9   :  { %v174_v50 = vpop.eup %173 }
  0xda   :  { %v91_v51 = vmul.f32 %v174_v50, %v88_v46 }
  0xdc   :  { %v93_v53 = vsel %vm92_vm6, %v88_v46, %v91_v51 }
  0xdd   :  { %v96_v54 = vsel %vm94_vm7, %v95_v52, %v93_v53  ;;  %v176_v55 = vpop.eup %175 }
  0xde   :  { %177 = vrcp.f32 %v96_v54  ;;  %v98_v56 = vmul.f32 %v176_v55, %v89_v49 }
  0xe0   :  { %v100_v58 = vsel %vm99_vm8, %v89_v49, %v98_v56 }
  0xe1   :  { %v103_v59 = vsel %vm101_vm9, %v102_v57, %v100_v58 }
  0xe2   :  { %179 = vrcp.f32 %v103_v59 }
  0xe8   :  { %v178_v61 = vpop.eup %177 }
  0xe9   :  { %v105_v62 = vmul.f32 %v178_v61, %v29_v60 }
  0xeb   :  { %v108_v2 = vmul.f32 %v105_v62, %v66_v25 }
  0xec   :  { %v180_v3 = vpop.eup %179 }
  0xed   :  { %v110_v4 = vadd.f32 %v108_v2, %v30_v63  ;;  %v107_v5 = vmul.f32 %v180_v3, %v29_v60 }
  0xef   :  { %181 = vtanh.f32 %v110_v4  ;;  %v109_v6 = vmul.f32 %v107_v5, %v67_v31 }
  0xf1   :  { %v111_v7 = vadd.f32 %v109_v6, %v30_v63 }
  0xf3   :  { %183 = vtanh.f32 %v111_v7 }
  0xf9   :  { %v182_v8 = vpop.eup %181 }
  0xfa   :  { %v114_v9 = vadd.f32 1.0, %v182_v8 }
  0xfc   :  { %118 = vperm.xlu1 %167, %v114_v9  }
  0xfd   :  { %v184_v10 = vpop.eup %183 }
  0xfe   :  { %v115_v11 = vadd.f32 1.0, %v184_v10 }
 0x100   :  { %122 = vperm.xlu1 %167, %v115_v11  }
 0x17b   :  { %v119_v18 = vpop.permute.xlu1 %118 }
 0x17c   :  { %v130_v19 = vrot.slane %v119_v18, %v129_v17 }
 0x17e   :  { %v140_v20 = vmul.f32 %v130_v19, %v269_v0 }
 0x17f   :  { %v123_v21 = vpop.permute.xlu1 %122 }
 0x180   :  { %142 = vst [vmem:[#allocation5] sm:$0xff] %v140_v20  ;;  %v137_v22 = vrot.slane %v123_v21, %v129_v17 }
 0x182   :  { %v141_v23 = vmul.f32 %v137_v22, %v271_v1 }
 0x184   :  { %143 = vst [vmem:[#allocation5 + $0x8] sm:$0xff] %v141_v23 }
 0x185   :  { %218 = shalt.err (!%p215_p12)
}
 0x186   :  { %s219_s4 = scalar_lea.hbm %s305_s2, 256 }
 0x187   :  { %p220_p13 = scmp.ne.s32.totalorder %s305_s2, %s219_s4  ;;  %p223_p0 = scmp.lt.u32.totalorder %s219_s4, %s305_s2 }
 0x189   :  { %p225_p1 = pnand %p223_p0, %p220_p13 }
 0x18b   :  { %228 = shalt.err (!%p225_p1)
}
 0x18c   :  { %155 = dma.vmem_to_hbm [thread:$0]  %s150_s28, 256, %s305_s2, [#allocation4], %s234_s19, %s234_s19, %s235_s20  }
 0x18d   :  { %231 = dma.done.wait [#allocation4], 256  }
 0x18e   :  { %232 = vsyncadd [#allocation4], 4294967040 }
 0x18f   :  { %159 = vsyncpa [#allocation3], 1 }
 0x190   :  { %160 = vsyncpa [#allocation4], 1 }

</bundles_post_ra>
